<compile_context>
chip_gen: v7x
topology: tpu7x:2x2x1
jax: 0.10.0
libtpu: 0.0.40
codegen_flags: <defaults>
</compile_context>

<pallas_src>
from functools import partial

import numpy as np
import jax
import jax.numpy as jnp
from jax import lax
from jax.experimental import pallas as pl
from jax.experimental.pallas import tpu as pltpu


# --------------------------- VMEM budgeting helpers ---------------------------
def _vmem_limit_bytes():
    """Per-call scoped VMEM limit: ~7/8 of physical (128 MiB v5e/v6e, 64 MiB v7x)."""
    try:
        cap = int(pltpu.get_tpu_info().vmem_capacity_bytes)
    except Exception:  # conservative fallback (v7x-sized)
        cap = 64 * 1024 * 1024
    return (cap * 7) // 8


def _pick_rows(M, per_row_bytes, resident_bytes, budget):
    """Largest row-tile dividing M whose double-buffered footprint fits budget."""
    for t in (1024, 512, 256, 128, 64, 32, 16, 8):
        if M % t == 0 and resident_bytes + 2 * t * per_row_bytes <= budget:
            return t
    # TODO(synk): pad M to a multiple of 8 rows instead of a single full block
    #             for large, oddly-sized M.
    return M


def _attention_tiles(Lq, Lk, E, heads, act_bytes, out_bytes, resident_bytes, budget):
    """Largest (tq, tk) pair whose pipelined + scratch footprint fits the budget."""
    def cands(L):
        c = [t for t in (1024, 512, 256, 128) if L % t == 0]
        return c or [L]
    for tq in cands(Lq):
        for tk in cands(Lk):
            scratch = 4 * (tq * E + 2 * heads * tq)          # f32 acc + m/l
            pipelined = 2 * (tq * E * act_bytes              # q tile
                             + 2 * tk * E * act_bytes        # k + v tiles
                             + tq * tk                       # int8 mask tile
                             + tq * E * out_bytes)           # output tile
            if resident_bytes + scratch + pipelined <= budget:
                return tq, tk
    return cands(Lq)[-1], cands(Lk)[-1]


# --------------------- Fused, tiled Q/K/V projection kernels ------------------
def _qkv_shared_x_kernel(x_ref, w_ref, b_ref, q_ref, k_ref, v_ref, *,
                         embed, compute_dtype):
    # x: (tm, E); w: (E, 3E) pre-transposed/pre-scaled/pre-cast; b: (1, 3E) f32.
    x = x_ref[...].astype(compute_dtype)
    y = jnp.dot(x, w_ref[...], preferred_element_type=jnp.float32) + b_ref[...]
    q_ref[...] = y[:, :embed].astype(q_ref.dtype)
    k_ref[...] = y[:, embed:2 * embed].astype(k_ref.dtype)
    v_ref[...] = y[:, 2 * embed:].astype(v_ref.dtype)


def _qkv_proj_kernel(xq_ref, xk_ref, xv_ref, w_ref, b_ref, q_ref, k_ref, v_ref, *,
                     embed, compute_dtype):
    # Distinct q/k/v inputs: three (tm,E)@(E,E) matmuls against lane slices of
    # the single resident (E, 3E) weight, one launch.
    def proj(x_ref, col, o_ref):
        lo, hi = col * embed, (col + 1) * embed
        y = jnp.dot(x_ref[...].astype(compute_dtype), w_ref[:, lo:hi],
                    preferred_element_type=jnp.float32) + b_ref[:, lo:hi]
        o_ref[...] = y.astype(o_ref.dtype)
    proj(xq_ref, 0, q_ref)
    proj(xk_ref, 1, k_ref)
    proj(xv_ref, 2, v_ref)


def qkv_projection(query, keys, values, w_qkv, b_qkv, compute_dtype, vmem_limit):
    N, L, E = query.shape
    M = N * L
    act_dtype = w_qkv.dtype
    in_b = np.dtype(query.dtype).itemsize
    act_b = np.dtype(act_dtype).itemsize
    resident = int(w_qkv.size) * act_b + int(b_qkv.size) * 4
    shared_x = (query is keys) and (keys is values)
    per_row = (E * in_b if shared_x else 3 * E * in_b) + 3 * E * act_b
    tm = _pick_rows(M, per_row, resident, int(vmem_limit * 0.9))

    x_spec = pl.BlockSpec((tm, E), lambda i: (i, 0))
    w_spec = pl.BlockSpec(memory_space=pltpu.MemorySpace.VMEM)  # resident, single-buffered
    out_sd = jax.ShapeDtypeStruct((M, E), act_dtype)

    if shared_x:
        kern = partial(_qkv_shared_x_kernel, embed=E, compute_dtype=compute_dtype)
        in_specs = [x_spec, w_spec, w_spec]
        args = (query.reshape(M, E), w_qkv, b_qkv)
    else:
        kern = partial(_qkv_proj_kernel, embed=E, compute_dtype=compute_dtype)
        in_specs = [x_spec, x_spec, x_spec, w_spec, w_spec]
        args = (query.reshape(M, E), keys.reshape(M, E), values.reshape(M, E),
                w_qkv, b_qkv)

    q2, k2, v2 = pl.pallas_call(
        kern,
        grid=(M // tm,),
        in_specs=in_specs,
        out_specs=[x_spec, x_spec, x_spec],
        out_shape=[out_sd, out_sd, out_sd],
        compiler_params=pltpu.CompilerParams(
            dimension_semantics=("parallel",), vmem_limit_bytes=vmem_limit),
    )(*args)
    return q2.reshape(N, L, E), k2.reshape(N, L, E), v2.reshape(N, L, E)


# ------------------- Tiled linear (cross-attention lengths) -------------------
def _linear_kernel(x_ref, wt_ref, b_ref, o_ref, *, compute_dtype):
    y = jnp.dot(x_ref[...].astype(compute_dtype), wt_ref[...],
                preferred_element_type=jnp.float32) + b_ref[...]
    o_ref[...] = y.astype(o_ref.dtype)


def _linear(x2d, wt, b, compute_dtype, vmem_limit):
    """y = x2d @ wt + b  (wt already transposed / scaled / cast)."""
    M, K = x2d.shape
    Nout = wt.shape[1]
    in_b = np.dtype(x2d.dtype).itemsize
    act_b = np.dtype(wt.dtype).itemsize
    resident = int(wt.size) * act_b + Nout * 4
    tm = _pick_rows(M, K * in_b + Nout * act_b, resident, int(vmem_limit * 0.9))
    return pl.pallas_call(
        partial(_linear_kernel, compute_dtype=compute_dtype),
        grid=(M // tm,),
        in_specs=[pl.BlockSpec((tm, K), lambda i: (i, 0)),
                  pl.BlockSpec(memory_space=pltpu.MemorySpace.VMEM),
                  pl.BlockSpec(memory_space=pltpu.MemorySpace.VMEM)],
        out_specs=pl.BlockSpec((tm, Nout), lambda i: (i, 0)),
        out_shape=jax.ShapeDtypeStruct((M, Nout), wt.dtype),
        compiler_params=pltpu.CompilerParams(
            dimension_semantics=("parallel",), vmem_limit_bytes=vmem_limit),
    )(x2d, wt, b)


# -------- Flash attention kernel (heads in lanes, online softmax, Wo fused) ----
def _flash_attention_kernel(q_ref, k_ref, v_ref, mask_ref, wo_ref, bo_ref,
                            o_ref, m_ref, l_ref, acc_ref, *,
                            heads, head_dim, compute_dtype):
    # q: (1,tq,E) k/v: (1,tk,E) mask: (1,tq,tk) int8; wo: (E,E) resident; bo: (1,E).
    # Scratch: m/l: (heads, tq, 1) f32, acc: (tq, E) f32 (unnormalized per-head AV).
    kv_idx = pl.program_id(2)

    @pl.when(kv_idx == 0)
    def _():
        m_ref[...] = jnp.full_like(m_ref, -jnp.inf)
        l_ref[...] = jnp.zeros_like(l_ref)
        acc_ref[...] = jnp.zeros_like(acc_ref)

    # Additive mask bias for this (tq, tk) tile, shared by all heads.
    bias = jnp.where(mask_ref[0].astype(jnp.float32) == 0.0,
                     jnp.float32(-1e20), jnp.float32(0.0))

    # One cast per tile (no per-head VPU passes); 1/sqrt(E) is already folded
    # into the query projection weights.
    qc = q_ref[0].astype(compute_dtype)      # (tq, E)
    kc = k_ref[0].astype(compute_dtype)      # (tk, E)
    vc = v_ref[0].astype(compute_dtype)      # (tk, E)

    # TODO(synk): batch heads into one dot_general (or pad head_dim to 128) when
    #             head_dim underfills the MXU.
    for h in range(heads):                   # small, static -> unrolled
        lo, hi = h * head_dim, (h + 1) * head_dim
        s = lax.dot_general(qc[:, lo:hi], kc[:, lo:hi],
                            dimension_numbers=(((1,), (1,)), ((), ())),
                            preferred_element_type=jnp.float32)     # (tq, tk)
        s = s + bias
        m_prev = m_ref[h]                                            # (tq, 1)
        m_new = jnp.maximum(m_prev, jnp.max(s, axis=-1, keepdims=True))
        alpha = jnp.exp(m_prev - m_new)
        p = jnp.exp(s - m_new)
        l_ref[h] = alpha * l_ref[h] + jnp.sum(p, axis=-1, keepdims=True)
        pv = jnp.dot(p.astype(compute_dtype), vc[:, lo:hi],
                     preferred_element_type=jnp.float32)             # (tq, D)
        acc_ref[:, lo:hi] = alpha * acc_ref[:, lo:hi] + pv
        m_ref[h] = m_new

    @pl.when(kv_idx == pl.num_programs(2) - 1)
    def _():
        # Per-head normalization (EUP approximate reciprocal), then the fused
        # output projection (fc_out) and one dense lane-wide (tq, E) store.
        for h in range(heads):
            lo, hi = h * head_dim, (h + 1) * head_dim
            acc_ref[:, lo:hi] = acc_ref[:, lo:hi] * pl.reciprocal(l_ref[h],
                                                                  approx=True)
        merged = acc_ref[...].astype(compute_dtype)                  # (tq, E)
        out = jnp.dot(merged, wo_ref[...], preferred_element_type=jnp.float32)
        o_ref[0] = (out + bo_ref[...]).astype(o_ref.dtype)


def _attention(q_p, k_p, v_p, mask_i8, wo_t, bo, heads, head_dim,
               out_dtype, compute_dtype, vmem_limit):
    N, Lq, E = q_p.shape
    Lk = k_p.shape[1]
    act_b = np.dtype(q_p.dtype).itemsize
    out_b = np.dtype(out_dtype).itemsize
    resident = int(wo_t.size) * np.dtype(wo_t.dtype).itemsize + int(bo.size) * 4
    tq, tk = _attention_tiles(Lq, Lk, E, heads, act_b, out_b, resident,
                              int(vmem_limit * 0.9))

    kern = partial(_flash_attention_kernel, heads=heads, head_dim=head_dim,
                   compute_dtype=compute_dtype)
    return pl.pallas_call(
        kern,
        grid=(N, Lq // tq, Lk // tk),
        in_specs=[
            pl.BlockSpec((1, tq, E), lambda n, qi, ki: (n, qi, 0)),
            pl.BlockSpec((1, tk, E), lambda n, qi, ki: (n, ki, 0)),
            pl.BlockSpec((1, tk, E), lambda n, qi, ki: (n, ki, 0)),
            pl.BlockSpec((1, tq, tk), lambda n, qi, ki: (n, qi, ki)),   # int8 mask
            pl.BlockSpec(memory_space=pltpu.MemorySpace.VMEM),          # Wo^T resident
            pl.BlockSpec(memory_space=pltpu.MemorySpace.VMEM),          # bo resident
        ],
        out_specs=pl.BlockSpec((1, tq, E), lambda n, qi, ki: (n, qi, 0)),
        out_shape=jax.ShapeDtypeStruct((N, Lq, E), out_dtype),
        scratch_shapes=[
            pltpu.VMEM((heads, tq, 1), jnp.float32),    # running max per head
            pltpu.VMEM((heads, tq, 1), jnp.float32),    # running denom per head
            pltpu.VMEM((tq, E), jnp.float32),           # unnormalized output acc
        ],
        compiler_params=pltpu.CompilerParams(
            dimension_semantics=("parallel", "parallel", "arbitrary"),
            vmem_limit_bytes=vmem_limit),
    )(q_p, k_p, v_p, mask_i8, wo_t, bo)


# ------------------------------- Forward pass ---------------------------------
def self_attention_forward(params, values, keys, query, mask, heads,
                           compute_dtype=jnp.bfloat16):
    """Matches SelfAttention.forward(values, keys, query, mask).

    compute_dtype controls MXU operand precision (accumulation & softmax stay
    f32).  Default bf16: MXU-native on v5e/v6e/v7x and halves inter-kernel HBM
    traffic; pass jnp.float32 for bit-closer-to-PyTorch numerics.
    """
    N, Lq, E = query.shape
    Lk, Lv = keys.shape[1], values.shape[1]
    assert Lk == Lv, "keys/values sequence lengths must match"
    D = E // heads
    assert D * heads == E, "embed_size must be divisible by heads"
    out_dtype = query.dtype
    vmem_limit = _vmem_limit_bytes()

    # Fold 1/sqrt(E) into the query projection (mathematically identical; saves
    # a per-tile VPU pass and avoids a bf16 double rounding of q).
    scale_inv = 1.0 / (float(E) ** 0.5)
    w_qkv = jnp.concatenate([params["Wq"].T * scale_inv,
                             params["Wk"].T,
                             params["Wv"].T], axis=1).astype(compute_dtype)  # (E, 3E)
    b_qkv = jnp.concatenate([params["bq"] * scale_inv,
                             params["bk"],
                             params["bv"]]).reshape(1, 3 * E).astype(jnp.float32)

    if query.shape == keys.shape == values.shape:
        q_p, k_p, v_p = qkv_projection(query, keys, values, w_qkv, b_qkv,
                                       compute_dtype, vmem_limit)
    else:  # cross-attention-style lengths: three separate tiled linears
        q_p = _linear(query.reshape(N * Lq, E), w_qkv[:, :E], b_qkv[:, :E],
                      compute_dtype, vmem_limit).reshape(N, Lq, E)
        k_p = _linear(keys.reshape(N * Lk, E), w_qkv[:, E:2 * E], b_qkv[:, E:2 * E],
                      compute_dtype, vmem_limit).reshape(N, Lk, E)
        v_p = _linear(values.reshape(N * Lv, E), w_qkv[:, 2 * E:], b_qkv[:, 2 * E:],
                      compute_dtype, vmem_limit).reshape(N, Lv, E)

    # int8 mask: 4x less HBM/VMEM than the f32 mask; 0 -> masked out.
    if mask is None:
        mask_i8 = jnp.ones((N, Lq, Lk), jnp.int8)
    else:
        mask_i8 = jnp.broadcast_to(mask != 0, (N, Lq, Lk)).astype(jnp.int8)

    wo_t = jnp.transpose(params["Wo"]).astype(compute_dtype)
    bo = params["bo"].reshape(1, E).astype(jnp.float32)

    return _attention(q_p, k_p, v_p, mask_i8, wo_t, bo, heads, D,
                      out_dtype, compute_dtype, vmem_limit)


# --------------------------- Pure-JAX reference -------------------------------
def reference_forward(params, values, keys, query, mask, heads):
    N, Lq, E = query.shape
    Lk, Lv = keys.shape[1], values.shape[1]
    D = E // heads
    v = values @ params["Wv"].T + params["bv"]
    k = keys @ params["Wk"].T + params["bk"]
    q = query @ params["Wq"].T + params["bq"]
    v = v.reshape(N, Lv, heads, D)
    k = k.reshape(N, Lk, heads, D)
    q = q.reshape(N, Lq, heads, D)
    energy = jnp.einsum("nqhd,nkhd->nhqk", q, k)
    energy = jnp.where(mask[:, None, :, :] == 0, -1e20, energy)
    attn = jax.nn.softmax(energy / (E ** 0.5), axis=3)
    out = jnp.einsum("nhql,nlhd->nqhd", attn, v).reshape(N, Lq, E)
    return out @ params["Wo"].T + params["bo"]


# ------------------------------- Init / main ----------------------------------
def init_params(key, embed_size):
    bound = 1.0 / np.sqrt(embed_size)       # torch.nn.Linear default init
    ks = jax.random.split(key, 8)
    u = lambda k, shape: jax.random.uniform(k, shape, jnp.float32, -bound, bound)
    return {
        "Wv": u(ks[0], (embed_size, embed_size)), "bv": u(ks[1], (embed_size,)),
        "Wk": u(ks[2], (embed_size, embed_size)), "bk": u(ks[3], (embed_size,)),
        "Wq": u(ks[4], (embed_size, embed_size)), "bq": u(ks[5], (embed_size,)),
        "Wo": u(ks[6], (embed_size, embed_size)), "bo": u(ks[7], (embed_size,)),
    }


if __name__ == "__main__":
    N, L, E, H = 2, 8, 32, 4

    key = jax.random.PRNGKey(0)
    kp, kv_, kk, kq = jax.random.split(key, 4)
    params = init_params(kp, E)

    values = jax.random.normal(kv_, (N, L, E), jnp.float32)
    keys = jax.random.normal(kk, (N, L, E), jnp.float32)
    query = jax.random.normal(kq, (N, L, E), jnp.float32)
    mask = jnp.tril(jnp.ones((L, L), jnp.float32))[None].repeat(N, axis=0)  # causal

    # --- exact-precision path: f32 MXU operands, distinct q/k/v tensors -------
    out_f32 = self_attention_forward(params, values, keys, query, mask, H,
                                     compute_dtype=jnp.float32)
    out_f32 = jax.block_until_ready(out_f32)
    ref = reference_forward(params, values, keys, query, mask, H)
    # tolerance covers the EUP approximate reciprocal in the softmax denominator
    np.testing.assert_allclose(np.asarray(out_f32), np.asarray(ref),
                               rtol=5e-3, atol=5e-3)

    # --- default bf16-MXU path, shared input (single (E,3E) QKV matmul) -------
    x = query
    out_bf16 = self_attention_forward(params, x, x, x, mask, H)
    out_bf16 = jax.block_until_ready(out_bf16)
    ref_x = reference_forward(params, x, x, x, mask, H)
    # looser tolerance: bf16 operand rounding (accumulation/softmax remain f32)
    np.testing.assert_allclose(np.asarray(out_bf16), np.asarray(ref_x),
                               rtol=5e-2, atol=3e-2)

    print("KERNEL_OK")
</pallas_src>

<mosaic_0001>
module attributes {stable_mosaic.version = 11 : i64} {
  func.func @_qkv_proj_kernel(%arg0: i32, %arg1: memref<16x32xf32, #tpu.memory_space<vmem>>, %arg2: memref<16x32xf32, #tpu.memory_space<vmem>>, %arg3: memref<16x32xf32, #tpu.memory_space<vmem>>, %arg4: memref<32x96xf32, #tpu.memory_space<vmem>>, %arg5: memref<1x96xf32, #tpu.memory_space<vmem>>, %arg6: memref<16x32xf32, #tpu.memory_space<vmem>>, %arg7: memref<16x32xf32, #tpu.memory_space<vmem>>, %arg8: memref<16x32xf32, #tpu.memory_space<vmem>>) attributes {dimension_semantics = [#tpu.dimension_semantics<parallel>], iteration_bounds = array<i64: 1>, scalar_prefetch = 0 : i64, scratch_operands = 0 : i64, tpu.core_type = #tpu.core_type<tc>, window_params = [{transform_indices = @transform_0, window_bounds = array<i64: 16, 32>}, {transform_indices = @transform_1, window_bounds = array<i64: 16, 32>}, {transform_indices = @transform_2, window_bounds = array<i64: 16, 32>}, {pipeline_mode = #tpu.pipeline_mode<synchronous>, transform_indices = @transform_3, window_bounds = array<i64: 32, 96>}, {pipeline_mode = #tpu.pipeline_mode<synchronous>, transform_indices = @transform_4, window_bounds = array<i64: 1, 96>}, {transform_indices = @transform_5, window_bounds = array<i64: 16, 32>}, {transform_indices = @transform_6, window_bounds = array<i64: 16, 32>}, {transform_indices = @transform_7, window_bounds = array<i64: 16, 32>}]} {
    %c0 = arith.constant 0 : index
    %c0_0 = arith.constant 0 : index
    %0 = vector.load %arg1[%c0, %c0_0] : memref<16x32xf32, #tpu.memory_space<vmem>>, vector<16x32xf32>
    %c0_1 = arith.constant 0 : index
    %c0_2 = arith.constant 0 : index
    %1 = vector.load %arg4[%c0_1, %c0_2] : memref<32x96xf32, #tpu.memory_space<vmem>>, vector<32x32xf32>
    %cst = arith.constant dense<0.000000e+00> : vector<16x32xf32>
    %2 = tpu.matmul %0, %1, %cst {dimension_numbers = #tpu.dot_dimension_numbers<[1], [0], [0], [1], [0, 0, 1, 1], [], []>} : vector<16x32xf32>, vector<32x32xf32>, vector<16x32xf32> -> vector<16x32xf32>
    %c0_3 = arith.constant 0 : index
    %c0_4 = arith.constant 0 : index
    %3 = vector.load %arg5[%c0_3, %c0_4] : memref<1x96xf32, #tpu.memory_space<vmem>>, vector<1x32xf32>
    %4 = vector.broadcast %3 : vector<1x32xf32> to vector<16x32xf32>
    %5 = arith.addf %2, %4 : vector<16x32xf32>
    %c0_5 = arith.constant 0 : index
    %c0_6 = arith.constant 0 : index
    %6 = vector.load %arg6[%c0_5, %c0_6] : memref<16x32xf32, #tpu.memory_space<vmem>>, vector<16x32xf32>
    tpu.vector_store %arg6[%c0_5, %c0_6], %5 {strides = array<i32>} : memref<16x32xf32, #tpu.memory_space<vmem>>, vector<16x32xf32>,
    %c0_7 = arith.constant 0 : index
    %c0_8 = arith.constant 0 : index
    %7 = vector.load %arg2[%c0_7, %c0_8] : memref<16x32xf32, #tpu.memory_space<vmem>>, vector<16x32xf32>
    %c0_9 = arith.constant 0 : index
    %c32 = arith.constant 32 : index
    %8 = vector.load %arg4[%c0_9, %c32] : memref<32x96xf32, #tpu.memory_space<vmem>>, vector<32x32xf32>
    %cst_10 = arith.constant dense<0.000000e+00> : vector<16x32xf32>
    %9 = tpu.matmul %7, %8, %cst_10 {dimension_numbers = #tpu.dot_dimension_numbers<[1], [0], [0], [1], [0, 0, 1, 1], [], []>} : vector<16x32xf32>, vector<32x32xf32>, vector<16x32xf32> -> vector<16x32xf32>
    %c0_11 = arith.constant 0 : index
    %c32_12 = arith.constant 32 : index
    %10 = vector.load %arg5[%c0_11, %c32_12] : memref<1x96xf32, #tpu.memory_space<vmem>>, vector<1x32xf32>
    %11 = vector.broadcast %10 : vector<1x32xf32> to vector<16x32xf32>
    %12 = arith.addf %9, %11 : vector<16x32xf32>
    %c0_13 = arith.constant 0 : index
    %c0_14 = arith.constant 0 : index
    %13 = vector.load %arg7[%c0_13, %c0_14] : memref<16x32xf32, #tpu.memory_space<vmem>>, vector<16x32xf32>
    tpu.vector_store %arg7[%c0_13, %c0_14], %12 {strides = array<i32>} : memref<16x32xf32, #tpu.memory_space<vmem>>, vector<16x32xf32>,
    %c0_15 = arith.constant 0 : index
    %c0_16 = arith.constant 0 : index
    %14 = vector.load %arg3[%c0_15, %c0_16] : memref<16x32xf32, #tpu.memory_space<vmem>>, vector<16x32xf32>
    %c0_17 = arith.constant 0 : index
    %c64 = arith.constant 64 : index
    %15 = vector.load %arg4[%c0_17, %c64] : memref<32x96xf32, #tpu.memory_space<vmem>>, vector<32x32xf32>
    %cst_18 = arith.constant dense<0.000000e+00> : vector<16x32xf32>
    %16 = tpu.matmul %14, %15, %cst_18 {dimension_numbers = #tpu.dot_dimension_numbers<[1], [0], [0], [1], [0, 0, 1, 1], [], []>} : vector<16x32xf32>, vector<32x32xf32>, vector<16x32xf32> -> vector<16x32xf32>
    %c0_19 = arith.constant 0 : index
    %c64_20 = arith.constant 64 : index
    %17 = vector.load %arg5[%c0_19, %c64_20] : memref<1x96xf32, #tpu.memory_space<vmem>>, vector<1x32xf32>
    %18 = vector.broadcast %17 : vector<1x32xf32> to vector<16x32xf32>
    %19 = arith.addf %16, %18 : vector<16x32xf32>
    %c0_21 = arith.constant 0 : index
    %c0_22 = arith.constant 0 : index
    %20 = vector.load %arg8[%c0_21, %c0_22] : memref<16x32xf32, #tpu.memory_space<vmem>>, vector<16x32xf32>
    tpu.vector_store %arg8[%c0_21, %c0_22], %19 {strides = array<i32>} : memref<16x32xf32, #tpu.memory_space<vmem>>, vector<16x32xf32>,
    return
  }
  func.func @transform_0(%arg0: i32) -> (i32, i32) {
    %c0_i32 = arith.constant 0 : i32
    %c0_i32_0 = arith.constant 0 : i32
    return %arg0, %c0_i32 : i32, i32
  }
  func.func @transform_1(%arg0: i32) -> (i32, i32) {
    %c0_i32 = arith.constant 0 : i32
    %c0_i32_0 = arith.constant 0 : i32
    return %arg0, %c0_i32 : i32, i32
  }
  func.func @transform_2(%arg0: i32) -> (i32, i32) {
    %c0_i32 = arith.constant 0 : i32
    %c0_i32_0 = arith.constant 0 : i32
    return %arg0, %c0_i32 : i32, i32
  }
  func.func @transform_3(%arg0: i32) -> (i32, i32) {
    %c0_i32 = arith.constant 0 : i32
    %c0_i32_0 = arith.constant 0 : i32
    %c0_i32_1 = arith.constant 0 : i32
    return %c0_i32, %c0_i32_0 : i32, i32
  }
  func.func @transform_4(%arg0: i32) -> (i32, i32) {
    %c0_i32 = arith.constant 0 : i32
    %c0_i32_0 = arith.constant 0 : i32
    %c0_i32_1 = arith.constant 0 : i32
    return %c0_i32, %c0_i32_0 : i32, i32
  }
  func.func @transform_5(%arg0: i32) -> (i32, i32) {
    %c0_i32 = arith.constant 0 : i32
    %c0_i32_0 = arith.constant 0 : i32
    return %arg0, %c0_i32 : i32, i32
  }
  func.func @transform_6(%arg0: i32) -> (i32, i32) {
    %c0_i32 = arith.constant 0 : i32
    %c0_i32_0 = arith.constant 0 : i32
    return %arg0, %c0_i32 : i32, i32
  }
  func.func @transform_7(%arg0: i32) -> (i32, i32) {
    %c0_i32 = arith.constant 0 : i32
    %c0_i32_0 = arith.constant 0 : i32
    return %arg0, %c0_i32 : i32, i32
  }
}

</mosaic_0001>

<bundles_post_ra>
// kernel: tpu_custom_call.1
= control target key start
LH: loop header
LB: loop body
LE: loop exit
PB: predicated region body
PF: predicated region fallthrough
CT: control target
= control target key end

     0   :  { %13 = vsyncpa [#allocation3], 0  ;;  %s919_s0 = inlined_call_operand.hbm [shape: f32[16,32], index: 0, kind: input, shape index: {}]   ;;  %s920_s1 = inlined_call_operand.hbm [shape: f32[16,32], index: 1, kind: input, shape index: {}]   ;;  %s921_s2 = inlined_call_operand.hbm [shape: f32[16,32], index: 2, kind: input, shape index: {}]   ;;  %s922_s3 = inlined_call_operand.hbm [shape: f32[32,96], index: 3, kind: input, shape index: {}]   ;;  %s923_s4 = inlined_call_operand.vmem [shape: f32[1,96], index: 4, kind: input, shape index: {}]   ;;  %s924_s5 = inlined_call_operand.hbm [shape: f32[16,32], index: 5, kind: output, shape index: {0}]   ;;  %s925_s6 = inlined_call_operand.hbm [shape: f32[16,32], index: 6, kind: output, shape index: {1}]   ;;  %s926_s7 = inlined_call_operand.hbm [shape: f32[16,32], index: 7, kind: output, shape index: {2}]  }
   0x1   :  { %14 = vsyncpa [#allocation6], 0 }
   0x2   :  { %15 = vsyncpa [#allocation9], 0 }
   0x3   :  { %16 = vsyncpa [#allocation4], 0 }
   0x4   :  { %17 = vsyncpa [#allocation12], 0  ;;  %s734_s24 = smov [#allocation5]   ;;  %s735_s26 = smov [#allocation2]  }
   0x5   :  { %s35_s25 = sshll.u32 %s734_s24, 4  ;;  %s23_s27 = sshll.u32 %s735_s26, 4  ;;  %s36_s25 = int_to_ptr.vmem [resolvable:$true] %s35_s25  ;;  %s785_s27 = int_to_ptr.vmem [resolvable:$true] %s23_s27 }
   0x6   :  { %s570_s30 = scalar_lea.hbm %s920_s1, 256 }
   0x7   :  { %p571_p0 = scmp.ne.s32.totalorder %s920_s1, %s570_s30  ;;  %p574_p1 = scmp.lt.u32.totalorder %s570_s30, %s920_s1 }
   0x9   :  { %p576_p2 = pnand %p574_p1, %p571_p0 }
   0xb   :  { %579 = shalt.err (!%p576_p2)
}
   0xc   :  { %s580_s12 = scalar_lea.vmem %s36_s25, 256  ;;  %p585_p4 = scmp.lt.s32.totalorder %s36_s25, %s36_s25 }
   0xd   :  { %p581_p3 = scmp.ne.s32.totalorder %s36_s25, %s580_s12  ;;  %p586_p5 = scmp.lt.s32.totalorder %s580_s12, %s580_s12 }
   0xf   :  { %p587_p6 = por %p586_p5, %p585_p4 }
  0x11   :  { %p588_p7 = pnand %p587_p6, %p581_p3 }
  0x13   :  { %591 = shalt.err (!%p588_p7)
}
  0x14   :  { %s736_s13 = smov 128   ;;  %s737_s14 = smov 8  }
  0x15   :  { %41 = dma.hbm_to_vmem [thread:$0]  %s920_s1, 256, %s36_s25, [#allocation6], %s736_s13, %s736_s13, %s737_s14  }
  0x16   :  { %s592_s19 = scalar_lea.hbm %s919_s0, 256 }
  0x17   :  { %p593_p8 = scmp.ne.s32.totalorder %s919_s0, %s592_s19  ;;  %p596_p9 = scmp.lt.u32.totalorder %s592_s19, %s919_s0 }
  0x19   :  { %p598_p10 = pnand %p596_p9, %p593_p8 }
  0x1b   :  { %601 = shalt.err (!%p598_p10)
}
  0x1c   :  { %s602_s24 = scalar_lea.vmem %s785_s27, 256  ;;  %p607_p12 = scmp.lt.s32.totalorder %s785_s27, %s785_s27 }
  0x1d   :  { %p603_p11 = scmp.ne.s32.totalorder %s785_s27, %s602_s24  ;;  %p608_p13 = scmp.lt.s32.totalorder %s602_s24, %s602_s24 }
  0x1f   :  { %p609_p0 = por %p608_p13, %p607_p12 }
  0x21   :  { %p610_p1 = pnand %p609_p0, %p603_p11 }
  0x23   :  { %613 = shalt.err (!%p610_p1)
}
  0x24   :  { %29 = dma.hbm_to_vmem [thread:$0]  %s919_s0, 256, %s785_s27, [#allocation3], %s736_s13, %s736_s13, %s737_s14  }
  0x25   :  { %s738_s26 = smov [#allocation7]   ;;  %s739_s29 = smov [#allocation8]  }
  0x26   :  { %s47_s28 = sshll.u32 %s738_s26, 4  ;;  %s59_s30 = sshll.u32 %s739_s29, 4  ;;  %s48_s28 = int_to_ptr.vmem [resolvable:$true] %s47_s28  ;;  %s822_s30 = int_to_ptr.vmem [resolvable:$true] %s59_s30 }
  0x27   :  { %s614_s10 = scalar_lea.hbm %s921_s2, 256 }
  0x28   :  { %p615_p2 = scmp.ne.s32.totalorder %s921_s2, %s614_s10  ;;  %p618_p3 = scmp.lt.u32.totalorder %s614_s10, %s921_s2 }
  0x2a   :  { %p620_p4 = pnand %p618_p3, %p615_p2 }
  0x2c   :  { %623 = shalt.err (!%p620_p4)
}
  0x2d   :  { %s624_s0 = scalar_lea.vmem %s48_s28, 256  ;;  %p629_p6 = scmp.lt.s32.totalorder %s48_s28, %s48_s28 }
  0x2e   :  { %p625_p5 = scmp.ne.s32.totalorder %s48_s28, %s624_s0  ;;  %p630_p7 = scmp.lt.s32.totalorder %s624_s0, %s624_s0 }
  0x30   :  { %p631_p8 = por %p630_p7, %p629_p6 }
  0x32   :  { %p632_p9 = pnand %p631_p8, %p625_p5 }
  0x34   :  { %635 = shalt.err (!%p632_p9)
}
  0x35   :  { %53 = dma.hbm_to_vmem [thread:$0]  %s921_s2, 256, %s48_s28, [#allocation6], %s736_s13, %s736_s13, %s737_s14  }
  0x36   :  { %s636_s20 = scalar_lea.hbm %s922_s3, 512 }
  0x37   :  { %p637_p10 = scmp.ne.s32.totalorder %s922_s3, %s636_s20  ;;  %p640_p11 = scmp.lt.u32.totalorder %s636_s20, %s922_s3 }
  0x39   :  { %p642_p12 = pnand %p640_p11, %p637_p10 }
  0x3b   :  { %645 = shalt.err (!%p642_p12)
}
  0x3c   :  { %s646_s1 = scalar_lea.vmem %s822_s30, 512  ;;  %p651_p0 = scmp.lt.s32.totalorder %s822_s30, %s822_s30 }
  0x3d   :  { %p647_p13 = scmp.ne.s32.totalorder %s822_s30, %s646_s1  ;;  %p652_p1 = scmp.lt.s32.totalorder %s646_s1, %s646_s1 }
  0x3f   :  { %p653_p2 = por %p652_p1, %p651_p0 }
  0x41   :  { %p654_p3 = pnand %p653_p2, %p647_p13 }
  0x43   :  { %657 = shalt.err (!%p654_p3)
}
  0x44   :  { %65 = dma.hbm_to_vmem [thread:$0]  %s922_s3, 512, %s822_s30, [#allocation9], %s736_s13, %s736_s13, %s737_s14  }
  0x45   :  { %724 = dma.done.wait [#allocation3], 256  }
  0x46   :  { %725 = vsyncadd [#allocation3], 4294967040 }
  0x47   :  { %726 = dma.done.wait [#allocation6], 512  }
  0x48   :  { %727 = vsyncadd [#allocation6], 4294966784 }
  0x49   :  { %728 = dma.done.wait [#allocation9], 512  }
  0x4a   :  { %729 = vsyncadd [#allocation9], 4294966784  ;;  %vm93_vm0 = vcmask 261120   ;;  %v179_v0 = vld [vmem:[#allocation8] sm:$0xff]  ;;  %v180_v1 = vld [vmem:[#allocation8 + $0x8] sm:$0xff]  ;;  %s740_s3 = smov 96  }
  0x4b   :  { %v181_v2 = vld [vmem:[#allocation8 + $0x10] sm:$0xff]  ;;  %v550_v3 = vpack.i.bf16 %v180_v1, %v179_v0  ;;  %v182_v4 = vld [vmem:[#allocation8 + $0x18] sm:$0xff]  ;;  %v515_v5 = vpack.c.bf16 %v180_v1, %v179_v0  ;;  %v177_v9 = vld [vmem:[#allocation5] sm:$0xff]  ;;  %s741_s26 = smov 64  }
  0x4c   :  { %v80_v6 = vld [vmem:[#allocation2] sm:$0xff]  ;;  %v560_v7 = vpack.i.bf16 %v182_v4, %v181_v2  ;;  %v519_v8 = vpack.c.bf16 %v182_v4, %v181_v2  ;;  %501 = vmatprep.mubr.msk.f32.mxu1 %vm93_vm0, %v177_v9  ;;  %v81_v10 = vld [vmem:[#allocation2 + $0x8] sm:$0xff]  ;;  %v178_v29 = vld [vmem:[#allocation5 + $0x8] sm:$0xff] }
  0x4d   :  { %490 = vmatprep.mubr.msk.f32.mxu0 %vm93_vm0, %v80_v6  ;;  %551 = vrot.lane.b32.xlu0 %v550_v3, %s740_s3  ;;  %v458_v11 = vld [vmem:[%s923_s4] ss:$0 sm:$0xff]  ;;  %v292_v30 = vld [vmem:[#allocation7 + $0x8] sm:$0xff]  ;;  %s742_s4 = smov [#allocation10]  }
  0x4e   :  { %516 = vmatprep.subr.bf16.mxu0 %v515_v5  ;;  %561 = vrot.lane.b32.xlu1 %v560_v7, %s740_s3  ;;  %v291_v12 = vld [vmem:[#allocation7] sm:$0xff]  ;;  %s410_s30 = sshll.u32 %s742_s4, 4  ;;  %s411_s30 = int_to_ptr.vmem [resolvable:$true] %s410_s30 }
  0x4f   :  { %518 = vmatpush3.bf16.msra.mxu0 %v515_v5  ;;  %s658_s8 = scalar_lea.vmem %s411_s30, 256  ;;  %p663_p5 = scmp.lt.s32.totalorder %s411_s30, %s411_s30 }
  0x50   :  { %520 = vmatprep.subr.bf16.mxu0 %v519_v8  ;;  %p659_p4 = scmp.ne.s32.totalorder %s411_s30, %s658_s8  ;;  %p664_p6 = scmp.lt.s32.totalorder %s658_s8, %s658_s8 }
  0x51   :  { %556 = vrot.lane.b32.xlu0 %v550_v3, %s741_s26 }
  0x52   :  { %566 = vrot.lane.b32.xlu1 %v560_v7, %s741_s26  ;;  %p665_p7 = por %p664_p6, %p663_p5 }
  0x53   :  { %522 = vmatpush3.bf16.msra.mxu0 %v519_v8 }
  0x54   :  { %p666_p8 = pnand %p665_p7, %p659_p4 }
  0x55   :  { %205 = vrot.lane.b32.xlu0 %v458_v11, %s740_s3 }
  0x56   :  { %491 = vmatmul.mubr.msk.f32.vlgmr.msra.gmra.mrb[0].mxu0 %vm93_vm0, %v81_v10  ;;  %319 = vrot.lane.b32.xlu1 %v458_v11, %s741_s26 }
  0x57   :  { %512 = vmatprep.mubr.msk.f32.mxu0 %vm93_vm0, %v291_v12 }
  0xbf   :  { %v552_v13 = vpop.permute.xlu0 %551 }
  0xc0   :  { %v554_v14 = vunpack.i.h.bf16 %v552_v13  ;;  %v553_v15 = vunpack.i.l.bf16 %v552_v13  ;;  %v562_v16 = vpop.permute.xlu1 %561 }
  0xc1   :  { %v564_v17 = vunpack.i.h.bf16 %v562_v16  ;;  %v563_v18 = vunpack.i.l.bf16 %v562_v16 }
  0xc2   :  { %v523_v19 = vpack.c.bf16 %v554_v14, %v553_v15 }
  0xc3   :  { %v527_v20 = vpack.c.bf16 %v564_v17, %v563_v18  ;;  %v557_v21 = vpop.permute.xlu0 %556 }
  0xc4   :  { %v559_v22 = vunpack.i.h.bf16 %v557_v21  ;;  %v558_v23 = vunpack.i.l.bf16 %v557_v21  ;;  %524 = vmatprep.subr.bf16.mxu1 %v523_v19  ;;  %v567_v24 = vpop.permute.xlu1 %566 }
  0xc5   :  { %526 = vmatpush3.bf16.msra.mxu1 %v523_v19  ;;  %v569_v25 = vunpack.i.h.bf16 %v567_v24  ;;  %v568_v26 = vunpack.i.l.bf16 %v567_v24 }
  0xc6   :  { %v531_v27 = vpack.c.bf16 %v559_v22, %v558_v23  ;;  %528 = vmatprep.subr.bf16.mxu1 %v527_v20 }
  0xc7   :  { %v535_v28 = vpack.c.bf16 %v569_v25, %v568_v26 }
  0xc8   :  { %532 = vmatprep.subr.bf16.mxu0 %v531_v27 }
  0xc9   :  { %530 = vmatpush3.bf16.msra.mxu1 %v527_v20  ;;  %534 = vmatpush3.bf16.msra.mxu0 %v531_v27 }
  0xca   :  { %536 = vmatprep.subr.bf16.mxu0 %v535_v28 }
  0xcc   :  { %502 = vmatmul.mubr.msk.f32.vlgmr.msra.gmra.mrb[0].mxu1 %vm93_vm0, %v178_v29 }
  0xcd   :  { %538 = vmatpush3.bf16.msra.mxu0 %v535_v28 }
  0xd0   :  { %513 = vmatmul.mubr.msk.f32.vlgmr.msra.gmra.mrb[2].mxu0 %vm93_vm0, %v292_v30 }
 0x129   :  { %v492_v31 = vpop.f32.mrb[0].mxu0 }
 0x12a   :  { %v172_v32 = vadd.f32 %v492_v31, %v458_v11  ;;  %v166_v33 = vpop.f32.mrb[1].mxu0 }
 0x12b   :  { %v167_v34 = vadd.f32 %v458_v11, %v166_v33 }
 0x12c   :  { %176 = vst.msk [vmem:[#allocation10 + $0x8] sm:$0xff] %vm93_vm0, %v172_v32 }
 0x12d   :  { %175 = vst.msk [vmem:[#allocation10] sm:$0xff] %vm93_vm0, %v167_v34 }
 0x12e   :  { %669 = shalt.err (!%p666_p8)
}
 0x12f   :  { %s670_s11 = scalar_lea.hbm %s924_s5, 256 }
 0x130   :  { %p671_p9 = scmp.ne.s32.totalorder %s924_s5, %s670_s11  ;;  %p674_p10 = scmp.lt.u32.totalorder %s670_s11, %s924_s5 }
 0x132   :  { %p676_p11 = pnand %p674_p10, %p671_p9 }
 0x134   :  { %679 = shalt.err (!%p676_p11)
}
 0x135   :  { %416 = dma.vmem_to_hbm [thread:$0]  %s411_s30, 256, %s924_s5, [#allocation4], %s736_s13, %s736_s13, %s737_s14   ;;  %v206_v35 = vpop.permute.xlu0 %205  ;;  %v320_v40 = vpop.permute.xlu1 %319 }
 0x136   :  { %s743_s18 = smov [#allocation11]   ;;  %s744_s20 = smov [#allocation13]  }
 0x137   :  { %s422_s19 = sshll.u32 %s743_s18, 4  ;;  %s434_s21 = sshll.u32 %s744_s20, 4  ;;  %s423_s19 = int_to_ptr.vmem [resolvable:$true] %s422_s19  ;;  %s435_s21 = int_to_ptr.vmem [resolvable:$true] %s434_s21 }
 0x138   :  { %s680_s22 = scalar_lea.vmem %s423_s19, 256  ;;  %p685_p13 = scmp.lt.s32.totalorder %s423_s19, %s423_s19 }
 0x139   :  { %p681_p12 = scmp.ne.s32.totalorder %s423_s19, %s680_s22  ;;  %p686_p0 = scmp.lt.s32.totalorder %s680_s22, %s680_s22 }
 0x13b   :  { %p687_p1 = por %p686_p0, %p685_p13 }
 0x13d   :  { %p688_p2 = pnand %p687_p1, %p681_p12 }
 0x19f   :  { %v503_v36 = vpop.f32.mrb[0].mxu1 }
 0x1a0   :  { %v286_v37 = vadd.f32 %v503_v36, %v206_v35  ;;  %v280_v38 = vpop.f32.mrb[1].mxu1 }
 0x1a1   :  { %v281_v39 = vadd.f32 %v280_v38, %v206_v35 }
 0x1a2   :  { %290 = vst.msk [vmem:[#allocation11 + $0x8] sm:$0xff] %vm93_vm0, %v286_v37 }
 0x1a3   :  { %289 = vst.msk [vmem:[#allocation11] sm:$0xff] %vm93_vm0, %v281_v39  ;;  %v514_v41 = vpop.f32.mrb[2].mxu0 }
 0x1a4   :  { %v400_v42 = vadd.f32 %v514_v41, %v320_v40  ;;  %v394_v43 = vpop.f32.mrb[3].mxu0 }
 0x1a5   :  { %691 = shalt.err (!%p688_p2)
}
 0x1a6   :  { %s692_s24 = scalar_lea.hbm %s925_s6, 256 }
 0x1a7   :  { %p693_p3 = scmp.ne.s32.totalorder %s925_s6, %s692_s24  ;;  %p696_p4 = scmp.lt.u32.totalorder %s692_s24, %s925_s6 }
 0x1a9   :  { %p698_p5 = pnand %p696_p4, %p693_p3 }
 0x1ab   :  { %701 = shalt.err (!%p698_p5)
}
 0x1ac   :  { %428 = dma.vmem_to_hbm [thread:$0]  %s423_s19, 256, %s925_s6, [#allocation12], %s736_s13, %s736_s13, %s737_s14   ;;  %v395_v44 = vadd.f32 %v394_v43, %v320_v40  ;;  %404 = vst.msk [vmem:[#allocation13 + $0x8] sm:$0xff] %vm93_vm0, %v400_v42 }
 0x1ad   :  { %s702_s29 = scalar_lea.vmem %s435_s21, 256  ;;  %p707_p7 = scmp.lt.s32.totalorder %s435_s21, %s435_s21 }
 0x1ae   :  { %403 = vst.msk [vmem:[#allocation13] sm:$0xff] %vm93_vm0, %v395_v44  ;;  %p703_p6 = scmp.ne.s32.totalorder %s435_s21, %s702_s29  ;;  %p708_p8 = scmp.lt.s32.totalorder %s702_s29, %s702_s29 }
 0x1b0   :  { %p709_p9 = por %p708_p8, %p707_p7 }
 0x1b2   :  { %p710_p10 = pnand %p709_p9, %p703_p6 }
 0x1b4   :  { %713 = shalt.err (!%p710_p10)
}
 0x1b5   :  { %s714_s8 = scalar_lea.hbm %s926_s7, 256 }
 0x1b6   :  { %p715_p11 = scmp.ne.s32.totalorder %s926_s7, %s714_s8  ;;  %p718_p12 = scmp.lt.u32.totalorder %s714_s8, %s926_s7 }
 0x1b8   :  { %p720_p13 = pnand %p718_p12, %p715_p11 }
 0x1ba   :  { %723 = shalt.err (!%p720_p13)
}
 0x1bb   :  { %440 = dma.vmem_to_hbm [thread:$0]  %s435_s21, 256, %s926_s7, [#allocation12], %s736_s13, %s736_s13, %s737_s14  }
 0x1bc   :  { %730 = dma.done.wait [#allocation4], 256  }
 0x1bd   :  { %731 = vsyncadd [#allocation4], 4294967040 }
 0x1be   :  { %732 = dma.done.wait [#allocation12], 512  }
 0x1bf   :  { %733 = vsyncadd [#allocation12], 4294966784 }
 0x1c0   :  { %450 = vsyncpa [#allocation3], 1 }
 0x1c1   :  { %451 = vsyncpa [#allocation6], 1 }
 0x1c2   :  { %452 = vsyncpa [#allocation9], 1 }
 0x1c3   :  { %453 = vsyncpa [#allocation4], 1 }
 0x1c4   :  { %454 = vsyncpa [#allocation12], 1 }

</bundles_post_ra>
